<compile_context>
chip_gen: v6e
topology: v6e:2x2x1
jax: 0.10.0
libtpu: 0.0.40
codegen_flags: <defaults>
</compile_context>

<pallas_src>
import jax
import jax.numpy as jnp
from jax import lax
from jax.experimental import pallas as pl
from jax.experimental.pallas import tpu as pltpu

LANES = 128          # vreg lane width; last dim of every block
CHUNK_ROWS = 1024    # rows processed per inner-loop step (bounds VMEM temporaries)
NUM_SPLITS = 2       # leading grid axis; sharded across TensorCores on v7x

# Remembers whether CORE_PARALLEL dimension semantics compiled on this chip.
_CORE_PARALLEL_STATE = {"ok": None}


def _cdiv(a, b):
    return -(-a // b)


def _block_config(itemsize):
    """Return (block_rows_budget, vmem_limit_bytes) tuned per TPU generation."""
    per_block_bytes = 4 * 1024 * 1024          # conservative: fits v7x (64 MiB/TC)
    vmem_limit = 32 * 1024 * 1024
    try:
        info = pltpu.get_tpu_info()
        cap = int(getattr(info, "vmem_capacity_bytes", 0) or 0)
        if cap >= 96 * 1024 * 1024:            # 128 MiB VMEM parts (v5e / v6e)
            per_block_bytes = 8 * 1024 * 1024
            vmem_limit = 56 * 1024 * 1024      # headroom even if cap is chip-wide
    except Exception:
        pass
    budget_rows = max(
        CHUNK_ROWS,
        (per_block_bytes // (LANES * itemsize) // CHUNK_ROWS) * CHUNK_ROWS)
    return budget_rows, vmem_limit


def _make_kernel(tile_rows, total_steps, full_steps, ragged_rows, steps_per_split):
    chunked = tile_rows >= CHUNK_ROWS
    if chunked:
        assert tile_rows % CHUNK_ROWS == 0
    n_chunks = tile_rows // CHUNK_ROWS

    def kernel(p_ref, t_ref, sum_ref, cnt_ref):
        s = pl.program_id(0)
        i = pl.program_id(1)

        # Zero this split's accumulators at the start of its reduction pass.
        @pl.when(i == 0)
        def _():
            sum_ref[...] = jnp.zeros_like(sum_ref)
            cnt_ref[...] = jnp.zeros_like(cnt_ref)

        step = s * steps_per_split + i            # linear step (may be a dup tail)

        def accumulate(row_start, n_rows, valid_rows):
            # Native-dtype elementwise math; widen to f32 only for accumulation.
            t = t_ref[pl.ds(row_start, n_rows), :]
            p = p_ref[pl.ds(row_start, n_rows), :]
            mask = t > 0
            if valid_rows is not None:            # only the ragged tail block
                rid = row_start + lax.broadcasted_iota(
                    jnp.int32, (n_rows, LANES), 0)
                mask = mask & (rid < valid_rows)
            # where() keeps NaN/Inf at masked positions out of the sum.
            diff = jnp.where(mask, jnp.abs(t - p), 0.0).astype(jnp.float32)
            cnt = mask.astype(jnp.float32)
            if n_rows % 8 == 0:
                # vreg-shaped accumulation: pure VALU adds, no cross-lane work.
                sum_ref[...] += diff.reshape(-1, 8, LANES).sum(axis=0)
                cnt_ref[...] += cnt.reshape(-1, 8, LANES).sum(axis=0)
            else:
                # Tiny-input fallback (n_rows < 8): one cross-sublane reduce.
                row0 = lax.broadcasted_iota(jnp.int32, (8, LANES), 0) == 0
                sum_ref[...] += jnp.where(
                    row0, jnp.sum(diff, axis=0, keepdims=True), 0.0)
                cnt_ref[...] += jnp.where(
                    row0, jnp.sum(cnt, axis=0, keepdims=True), 0.0)

        # Guaranteed-full blocks: no bounds mask at all (hot path).
        @pl.when(step < full_steps)
        def _():
            if chunked:
                def body(c, carry):
                    start = pl.multiple_of(c * CHUNK_ROWS, CHUNK_ROWS)
                    accumulate(start, CHUNK_ROWS, None)
                    return carry
                lax.fori_loop(0, n_chunks, body, 0)
            else:
                accumulate(0, tile_rows, None)

        # Single ragged tail block (if any): row-bounds mask only here.
        if ragged_rows:
            @pl.when(step == total_steps - 1)
            def _():
                if chunked:
                    n_r = _cdiv(ragged_rows, CHUNK_ROWS)

                    def body(c, carry):
                        start = pl.multiple_of(c * CHUNK_ROWS, CHUNK_ROWS)
                        accumulate(start, CHUNK_ROWS, ragged_rows)
                        return carry
                    lax.fori_loop(0, n_r, body, 0)
                else:
                    accumulate(0, tile_rows, ragged_rows)

    return kernel


def _dim0_options(num_splits):
    if num_splits <= 1:
        return [("arbitrary", "arbitrary")]
    opts = []
    core_parallel = getattr(pltpu, "CORE_PARALLEL", None)
    arbitrary = getattr(pltpu, "ARBITRARY", "arbitrary")
    if core_parallel is not None and _CORE_PARALLEL_STATE["ok"] is not False:
        opts.append((core_parallel, arbitrary))   # both TCs stream on v7x
    opts.append(("parallel", "arbitrary"))        # safe fallback (neutral 1-TC)
    return opts


def masked_l1_loss(pred, target, *, block_rows=None, vmem_limit_bytes=None):
    """Pallas equivalent of MaskedL1Loss.forward(pred, target)."""
    assert pred.ndim == target.ndim, "inconsistent dimensions"
    assert pred.shape == target.shape, "inconsistent shapes"

    out_dtype = jnp.result_type(pred.dtype, target.dtype)
    total = pred.size
    if total == 0:
        return jnp.asarray(jnp.nan, dtype=out_dtype)

    # Stream inputs in their native dtype as a lane-dense (rows, 128) slab.
    p_flat = pred.reshape(-1)
    t_flat = target.reshape(-1)
    rem = total % LANES
    if rem:
        # Minimal, unavoidable pad (< 128 elements) to get a 2-D lane view.
        # Padded targets are 0 -> excluded by the mask.
        pad = LANES - rem
        p_flat = jnp.pad(p_flat, (0, pad))
        t_flat = jnp.pad(t_flat, (0, pad))
    rows = _cdiv(total, LANES)
    p2d = p_flat.reshape(rows, LANES)
    t2d = t_flat.reshape(rows, LANES)

    itemsize = max(jnp.dtype(pred.dtype).itemsize, jnp.dtype(target.dtype).itemsize)
    budget_rows, auto_vmem_limit = _block_config(itemsize)
    if block_rows is not None:
        budget_rows = max(CHUNK_ROWS, (int(block_rows) // CHUNK_ROWS) * CHUNK_ROWS)
    if vmem_limit_bytes is None:
        vmem_limit_bytes = auto_vmem_limit

    if rows >= CHUNK_ROWS:
        # Block rows: multiple of CHUNK_ROWS, as big as the VMEM budget allows.
        tile_rows = min(budget_rows, (rows // CHUNK_ROWS) * CHUNK_ROWS)
    else:
        tile_rows = rows                          # single (full) block

    total_steps = _cdiv(rows, tile_rows)
    ragged_rows = rows - (total_steps - 1) * tile_rows
    if ragged_rows == tile_rows:
        ragged_rows = 0                           # last block is full
    full_steps = total_steps - (1 if ragged_rows else 0)

    num_splits = NUM_SPLITS if total_steps >= NUM_SPLITS else 1
    steps_per_split = _cdiv(total_steps, num_splits)

    kernel = _make_kernel(tile_rows, total_steps, full_steps, ragged_rows,
                          steps_per_split)

    def in_index_map(s, i):
        step = s * steps_per_split + i
        # Duplicated tail steps re-read the last block (skipped in-kernel by
        # the scalar guards) instead of issuing an out-of-bounds DMA.
        return (jnp.minimum(step, total_steps - 1), 0)

    def build(dim_semantics):
        return pl.pallas_call(
            kernel,
            out_shape=(
                jax.ShapeDtypeStruct((num_splits, 8, LANES), jnp.float32),
                jax.ShapeDtypeStruct((num_splits, 8, LANES), jnp.float32),
            ),
            grid_spec=pltpu.PrefetchScalarGridSpec(
                num_scalar_prefetch=0,
                grid=(num_splits, steps_per_split),
                in_specs=[
                    pl.BlockSpec((tile_rows, LANES), in_index_map),
                    pl.BlockSpec((tile_rows, LANES), in_index_map),
                ],
                out_specs=[
                    pl.BlockSpec((None, 8, LANES), lambda s, i: (s, 0, 0)),
                    pl.BlockSpec((None, 8, LANES), lambda s, i: (s, 0, 0)),
                ],
            ),
            compiler_params=pltpu.CompilerParams(
                dimension_semantics=dim_semantics,
                vmem_limit_bytes=vmem_limit_bytes,
            ),
        )

    options = _dim0_options(num_splits)
    sums = cnts = None
    for idx, sem in enumerate(options):
        if idx == len(options) - 1:
            sums, cnts = build(sem)(p2d, t2d)
            break
        # Best-effort CORE_PARALLEL probe (2 TCs on v7x).  NOTE: assumes eager
        # execution; under an outer jit pre-set
        # _CORE_PARALLEL_STATE["ok"] = False to skip the probe.
        try:
            sums, cnts = build(sem)(p2d, t2d)
            _CORE_PARALLEL_STATE["ok"] = True
            break
        except Exception:
            _CORE_PARALLEL_STATE["ok"] = False

    # Single cheap cross-lane reduce outside the hot loop (tiny arrays).
    total_sum = jnp.sum(sums)
    total_cnt = jnp.sum(cnts)
    # NaN if no element is valid, matching torch .mean() of an empty selection.
    return (total_sum / total_cnt).astype(out_dtype)


if __name__ == "__main__":
    key = jax.random.PRNGKey(0)
    k1, k2, k3, k4 = jax.random.split(key, 4)

    # --- required small example, shapes consistent with the module ---
    N, C, H, W = 2, 4, 16, 16
    pred = jax.random.normal(k1, (N, C, H, W), dtype=jnp.float32)
    target = jax.random.normal(k2, (N, C, H, W), dtype=jnp.float32)

    loss = jax.block_until_ready(masked_l1_loss(pred, target))

    mask = target > 0
    ref = jnp.sum(jnp.where(mask, jnp.abs(target - pred), 0.0)) / jnp.sum(mask)
    assert jnp.allclose(loss, ref, rtol=1e-5, atol=1e-6), (loss, ref)

    # --- larger check: multi-block, 2-way split with a duplicated tail step,
    #     ragged last block, and a lane-unaligned total (pad path) ---
    total = 4999 * 128 + 91                       # not a multiple of 128
    pred_b = jax.random.normal(k3, (total,), dtype=jnp.float32)
    target_b = jax.random.normal(k4, (total,), dtype=jnp.float32)
    loss_b = jax.block_until_ready(
        masked_l1_loss(pred_b, target_b, block_rows=2048))
    mask_b = target_b > 0
    ref_b = (jnp.sum(jnp.where(mask_b, jnp.abs(target_b - pred_b), 0.0))
             / jnp.sum(mask_b))
    assert jnp.allclose(loss_b, ref_b, rtol=1e-4, atol=1e-5), (loss_b, ref_b)

    print("KERNEL_OK")
</pallas_src>

<mosaic_0001>
module attributes {stable_mosaic.version = 11 : i64} {
  func.func @kernel(%arg0: i32, %arg1: i32, %arg2: memref<16x128xf32, #tpu.memory_space<vmem>>, %arg3: memref<16x128xf32, #tpu.memory_space<vmem>>, %arg4: memref<1x8x128xf32, #tpu.memory_space<vmem>>, %arg5: memref<1x8x128xf32, #tpu.memory_space<vmem>>) attributes {dimension_semantics = [#tpu.dimension_semantics<arbitrary>, #tpu.dimension_semantics<arbitrary>], iteration_bounds = array<i64: 1, 1>, scalar_prefetch = 0 : i64, scratch_operands = 0 : i64, tpu.core_type = #tpu.core_type<tc>, window_params = [{transform_indices = @transform_0, window_bounds = array<i64: 16, 128>}, {transform_indices = @transform_1, window_bounds = array<i64: 16, 128>}, {transform_indices = @transform_2, window_bounds = array<i64: 1, 8, 128>}, {transform_indices = @transform_3, window_bounds = array<i64: 1, 8, 128>}]} {
    %c0_i32 = arith.constant 0 : i32
    %0 = arith.cmpi eq, %arg1, %c0_i32 : i32
    %1 = arith.extui %0 : i1 to i32
    %c0_i32_0 = arith.constant 0 : i32
    %2 = arith.cmpi ne, %1, %c0_i32_0 : i32
    scf.if %2 {
      %cst = arith.constant 0.000000e+00 : f32
      %8 = vector.broadcast %cst : f32 to vector<8x128xf32>
      %c0 = arith.constant 0 : index
      %c0_3 = arith.constant 0 : index
      %c0_4 = arith.constant 0 : index
      %9 = vector.load %arg4[%c0, %c0_3, %c0_4] : memref<1x8x128xf32, #tpu.memory_space<vmem>>, vector<1x8x128xf32>
      %10 = vector.shape_cast %9 : vector<1x8x128xf32> to vector<8x128xf32>
      %11 = vector.shape_cast %8 : vector<8x128xf32> to vector<1x8x128xf32>
      tpu.vector_store %arg4[%c0, %c0_3, %c0_4], %11 {strides = array<i32>} : memref<1x8x128xf32, #tpu.memory_space<vmem>>, vector<1x8x128xf32>,
      %cst_5 = arith.constant 0.000000e+00 : f32
      %12 = vector.broadcast %cst_5 : f32 to vector<8x128xf32>
      %c0_6 = arith.constant 0 : index
      %c0_7 = arith.constant 0 : index
      %c0_8 = arith.constant 0 : index
      %13 = vector.load %arg5[%c0_6, %c0_7, %c0_8] : memref<1x8x128xf32, #tpu.memory_space<vmem>>, vector<1x8x128xf32>
      %14 = vector.shape_cast %13 : vector<1x8x128xf32> to vector<8x128xf32>
      %15 = vector.shape_cast %12 : vector<8x128xf32> to vector<1x8x128xf32>
      tpu.vector_store %arg5[%c0_6, %c0_7, %c0_8], %15 {strides = array<i32>} : memref<1x8x128xf32, #tpu.memory_space<vmem>>, vector<1x8x128xf32>,
    } else {
    }
    %c1_i32 = arith.constant 1 : i32
    %3 = arith.muli %arg0, %c1_i32 : i32
    %4 = arith.addi %3, %arg1 : i32
    %c1_i32_1 = arith.constant 1 : i32
    %5 = arith.cmpi slt, %4, %c1_i32_1 : i32
    %6 = arith.extui %5 : i1 to i32
    %c0_i32_2 = arith.constant 0 : i32
    %7 = arith.cmpi ne, %6, %c0_i32_2 : i32
    scf.if %7 {
      %c0 = arith.constant 0 : index
      %c0_3 = arith.constant 0 : index
      %8 = vector.load %arg3[%c0, %c0_3] : memref<16x128xf32, #tpu.memory_space<vmem>>, vector<16x128xf32>
      %c0_4 = arith.constant 0 : index
      %c0_5 = arith.constant 0 : index
      %9 = vector.load %arg2[%c0_4, %c0_5] : memref<16x128xf32, #tpu.memory_space<vmem>>, vector<16x128xf32>
      %cst = arith.constant 0.000000e+00 : f32
      %10 = vector.broadcast %cst : f32 to vector<16x128xf32>
      %11 = arith.cmpf ogt, %8, %10 : vector<16x128xf32>
      %12 = arith.subf %8, %9 : vector<16x128xf32>
      %13 = math.absf %12 : vector<16x128xf32>
      %cst_6 = arith.constant 0.000000e+00 : f32
      %14 = vector.broadcast %cst_6 : f32 to vector<16x128xf32>
      %15 = arith.select %11, %13, %14 : vector<16x128xi1>, vector<16x128xf32>
      %16 = arith.extui %11 : vector<16x128xi1> to vector<16x128xi32>
      %17 = arith.sitofp %16 : vector<16x128xi32> to vector<16x128xf32>
      %c0_7 = arith.constant 0 : index
      %c0_8 = arith.constant 0 : index
      %c0_9 = arith.constant 0 : index
      %18 = vector.load %arg4[%c0_7, %c0_8, %c0_9] : memref<1x8x128xf32, #tpu.memory_space<vmem>>, vector<1x8x128xf32>
      %19 = vector.shape_cast %18 : vector<1x8x128xf32> to vector<8x128xf32>
      %20 = vector.shape_cast %15 : vector<16x128xf32> to vector<2x8x128xf32>
      %cst_10 = arith.constant dense<0.000000e+00> : vector<8x128xf32>
      %21 = vector.multi_reduction <add>, %20, %cst_10 [0] : vector<2x8x128xf32> to vector<8x128xf32>
      %22 = arith.addf %19, %21 : vector<8x128xf32>
      %c0_11 = arith.constant 0 : index
      %c0_12 = arith.constant 0 : index
      %c0_13 = arith.constant 0 : index
      %23 = vector.load %arg4[%c0_11, %c0_12, %c0_13] : memref<1x8x128xf32, #tpu.memory_space<vmem>>, vector<1x8x128xf32>
      %24 = vector.shape_cast %23 : vector<1x8x128xf32> to vector<8x128xf32>
      %25 = vector.shape_cast %22 : vector<8x128xf32> to vector<1x8x128xf32>
      tpu.vector_store %arg4[%c0_11, %c0_12, %c0_13], %25 {strides = array<i32>} : memref<1x8x128xf32, #tpu.memory_space<vmem>>, vector<1x8x128xf32>,
      %c0_14 = arith.constant 0 : index
      %c0_15 = arith.constant 0 : index
      %c0_16 = arith.constant 0 : index
      %26 = vector.load %arg5[%c0_14, %c0_15, %c0_16] : memref<1x8x128xf32, #tpu.memory_space<vmem>>, vector<1x8x128xf32>
      %27 = vector.shape_cast %26 : vector<1x8x128xf32> to vector<8x128xf32>
      %28 = vector.shape_cast %17 : vector<16x128xf32> to vector<2x8x128xf32>
      %cst_17 = arith.constant dense<0.000000e+00> : vector<8x128xf32>
      %29 = vector.multi_reduction <add>, %28, %cst_17 [0] : vector<2x8x128xf32> to vector<8x128xf32>
      %30 = arith.addf %27, %29 : vector<8x128xf32>
      %c0_18 = arith.constant 0 : index
      %c0_19 = arith.constant 0 : index
      %c0_20 = arith.constant 0 : index
      %31 = vector.load %arg5[%c0_18, %c0_19, %c0_20] : memref<1x8x128xf32, #tpu.memory_space<vmem>>, vector<1x8x128xf32>
      %32 = vector.shape_cast %31 : vector<1x8x128xf32> to vector<8x128xf32>
      %33 = vector.shape_cast %30 : vector<8x128xf32> to vector<1x8x128xf32>
      tpu.vector_store %arg5[%c0_18, %c0_19, %c0_20], %33 {strides = array<i32>} : memref<1x8x128xf32, #tpu.memory_space<vmem>>, vector<1x8x128xf32>,
    } else {
    }
    return
  }
  func.func @transform_0(%arg0: i32, %arg1: i32) -> (i32, i32) {
    %c1_i32 = arith.constant 1 : i32
    %0 = arith.muli %arg0, %c1_i32 : i32
    %1 = arith.addi %0, %arg1 : i32
    %c0_i32 = arith.constant 0 : i32
    %2 = arith.minsi %1, %c0_i32 : i32
    %c0_i32_0 = arith.constant 0 : i32
    %c0_i32_1 = arith.constant 0 : i32
    return %2, %c0_i32_0 : i32, i32
  }
  func.func @transform_1(%arg0: i32, %arg1: i32) -> (i32, i32) {
    %c1_i32 = arith.constant 1 : i32
    %0 = arith.muli %arg0, %c1_i32 : i32
    %1 = arith.addi %0, %arg1 : i32
    %c0_i32 = arith.constant 0 : i32
    %2 = arith.minsi %1, %c0_i32 : i32
    %c0_i32_0 = arith.constant 0 : i32
    %c0_i32_1 = arith.constant 0 : i32
    return %2, %c0_i32_0 : i32, i32
  }
  func.func @transform_2(%arg0: i32, %arg1: i32) -> (i32, i32, i32) {
    %c0_i32 = arith.constant 0 : i32
    %c0_i32_0 = arith.constant 0 : i32
    %c0_i32_1 = arith.constant 0 : i32
    return %arg0, %c0_i32, %c0_i32_0 : i32, i32, i32
  }
  func.func @transform_3(%arg0: i32, %arg1: i32) -> (i32, i32, i32) {
    %c0_i32 = arith.constant 0 : i32
    %c0_i32_0 = arith.constant 0 : i32
    %c0_i32_1 = arith.constant 0 : i32
    return %arg0, %c0_i32, %c0_i32_0 : i32, i32, i32
  }
}

</mosaic_0001>

<bundles_post_ra>
// kernel: tpu_custom_call.1
= control target key start
LH: loop header
LB: loop body
LE: loop exit
PB: predicated region body
PF: predicated region fallthrough
CT: control target
= control target key end

     0   :  { %9 = vsyncpa [#allocation3], 0  ;;  %s268_s0 = inlined_call_operand.hbm [shape: f32[16,128], index: 0, kind: input, shape index: {}]   ;;  %s269_s1 = inlined_call_operand.hbm [shape: f32[16,128], index: 1, kind: input, shape index: {}]   ;;  %s270_s2 = inlined_call_operand.hbm [shape: f32[1,8,128], index: 2, kind: output, shape index: {0}]   ;;  %s271_s3 = inlined_call_operand.hbm [shape: f32[1,8,128], index: 3, kind: output, shape index: {1}]  }
   0x1   :  { %10 = vsyncpa [#allocation6], 0 }
   0x2   :  { %11 = vsyncpa [#allocation4], 0 }
   0x3   :  { %12 = vsyncpa [#allocation9], 0  ;;  %s229_s12 = smov [#allocation2]  }
   0x4   :  { %s24_s13 = sshll.u32 %s229_s12, 4  ;;  %s25_s13 = int_to_ptr.vmem [resolvable:$true] %s24_s13 }
   0x5   :  { %s149_s14 = scalar_lea.vmem %s25_s13, 256  ;;  %p154_p1 = scmp.lt.s32.totalorder %s25_s13, %s25_s13 }
   0x6   :  { %p150_p0 = scmp.ne.s32.totalorder %s25_s13, %s149_s14  ;;  %p155_p2 = scmp.lt.s32.totalorder %s149_s14, %s149_s14 }
   0x8   :  { %p156_p3 = por %p155_p2, %p154_p1 }
   0xa   :  { %p157_p4 = pnand %p156_p3, %p150_p0 }
   0xc   :  { %160 = shalt.err (!%p157_p4)
}
   0xd   :  { %s230_s15 = smov 128   ;;  %s231_s16 = smov 8  }
   0xe   :  { %30 = dma.hbm_to_vmem [thread:$0]  %s268_s0, 256, %s25_s13, [#allocation3], %s230_s15, %s230_s15, %s231_s16  }
   0xf   :  { %s232_s19 = smov [#allocation5]  }
  0x10   :  { %s42_s20 = sshll.u32 %s232_s19, 4  ;;  %s43_s20 = int_to_ptr.vmem [resolvable:$true] %s42_s20 }
  0x11   :  { %s169_s21 = scalar_lea.vmem %s43_s20, 256  ;;  %p174_p6 = scmp.lt.s32.totalorder %s43_s20, %s43_s20 }
  0x12   :  { %p170_p5 = scmp.ne.s32.totalorder %s43_s20, %s169_s21  ;;  %p175_p7 = scmp.lt.s32.totalorder %s169_s21, %s169_s21 }
  0x14   :  { %p176_p8 = por %p175_p7, %p174_p6 }
  0x16   :  { %p177_p9 = pnand %p176_p8, %p170_p5 }
  0x18   :  { %180 = shalt.err (!%p177_p9)
}
  0x19   :  { %48 = dma.hbm_to_vmem [thread:$0]  %s269_s1, 256, %s43_s20, [#allocation6], %s230_s15, %s230_s15, %s231_s16  }
  0x1a   :  { %221 = dma.done.wait [#allocation3], 256  }
  0x1b   :  { %222 = vsyncadd [#allocation3], 4294967040 }
  0x1c   :  { %223 = dma.done.wait [#allocation6], 256  }
  0x1d   :  { %224 = vsyncadd [#allocation6], 4294967040  ;;  %v74_v0 = vld [vmem:[#allocation5] sm:$0xff]  ;;  %v75_v1 = vld [vmem:[#allocation5 + $0x8] sm:$0xff]  ;;  %v233_v6 = vmov 0.0   ;;  %s234_s0 = smov [#allocation8]  }
  0x1e   :  { %v76_v2 = vld [vmem:[#allocation2] sm:$0xff]  ;;  %v77_v3 = vld [vmem:[#allocation2 + $0x8] sm:$0xff]  ;;  %vm78_vm0 = vcmp.gt.f32.partialorder %v74_v0, 0.0  ;;  %vm79_vm1 = vcmp.gt.f32.partialorder %v75_v1, 0.0  ;;  %s114_s24 = sshll.u32 %s234_s0, 4  ;;  %s235_s1 = smov [#allocation7]   ;;  %s115_s24 = int_to_ptr.vmem [resolvable:$true] %s114_s24 }
  0x1f   :  { %v80_v4 = vsub.f32 %v74_v0, %v76_v2  ;;  %v81_v5 = vsub.f32 %v75_v1, %v77_v3  ;;  %v132_v7 = vsel %vm78_vm0, 1.0, %v233_v6  ;;  %v133_v8 = vsel %vm79_vm1, 1.0, %v233_v6  ;;  %s104_s25 = sshll.u32 %s235_s1, 4  ;;  %s181_s26 = scalar_lea.vmem %s115_s24, 128  ;;  %s105_s25 = int_to_ptr.vmem [resolvable:$true] %s104_s25 }
  0x20   :  { %v95_v10 = vadd.f32 %v133_v8, %v132_v7  ;;  %p182_p10 = scmp.ne.s32.totalorder %s115_s24, %s181_s26  ;;  %p186_p11 = scmp.lt.s32.totalorder %s115_s24, %s115_s24 }
  0x21   :  { %v82_v9 = vand.u32 2147483647, %v80_v4  ;;  %v83_v11 = vand.u32 2147483647, %v81_v5  ;;  %p187_p12 = scmp.lt.s32.totalorder %s181_s26, %s181_s26 }
  0x22   :  { %97 = vst [vmem:[#allocation8] sm:$0xff] %v95_v10 }
  0x23   :  { %v84_v12 = vsel %vm78_vm0, %v82_v9, 0.0  ;;  %v85_v13 = vsel %vm79_vm1, %v83_v11, 0.0  ;;  %p188_p13 = por %p187_p12, %p186_p11 }
  0x24   :  { %v91_v14 = vadd.f32 %v85_v13, %v84_v12 }
  0x25   :  { %p189_p0 = pnand %p188_p13, %p182_p10 }
  0x27   :  { %192 = shalt.err (!%p189_p0)
}
  0x28   :  { %117 = dma.vmem_to_hbm [thread:$0]  %s115_s24, 128, %s271_s3, [#allocation9]   ;;  %93 = vst [vmem:[#allocation7] sm:$0xff] %v91_v14 }
  0x29   :  { %s201_s29 = scalar_lea.vmem %s105_s25, 128  ;;  %p206_p2 = scmp.lt.s32.totalorder %s105_s25, %s105_s25 }
  0x2a   :  { %p202_p1 = scmp.ne.s32.totalorder %s105_s25, %s201_s29  ;;  %p207_p3 = scmp.lt.s32.totalorder %s201_s29, %s201_s29 }
  0x2c   :  { %p208_p4 = por %p207_p3, %p206_p2 }
  0x2e   :  { %p209_p5 = pnand %p208_p4, %p202_p1 }
  0x30   :  { %212 = shalt.err (!%p209_p5)
}
  0x31   :  { %107 = dma.vmem_to_hbm [thread:$0]  %s105_s25, 128, %s270_s2, [#allocation4]  }
  0x32   :  { %225 = dma.done.wait [#allocation4], 128  }
  0x33   :  { %226 = vsyncadd [#allocation4], 4294967168 }
  0x34   :  { %227 = dma.done.wait [#allocation9], 128  }
  0x35   :  { %228 = vsyncadd [#allocation9], 4294967168 }
  0x36   :  { %124 = vsyncpa [#allocation3], 1 }
  0x37   :  { %125 = vsyncpa [#allocation6], 1 }
  0x38   :  { %126 = vsyncpa [#allocation4], 1 }
  0x39   :  { %127 = vsyncpa [#allocation9], 1 }

</bundles_post_ra>
